<compile_context>
chip_gen: v7x
topology: tpu7x:2x2x1
jax: 0.10.0
libtpu: 0.0.40
codegen_flags: <defaults>
</compile_context>

<pallas_src>
import functools
import math

import jax
import jax.numpy as jnp
from jax.experimental import pallas as pl
from jax.experimental.pallas import tpu as pltpu

# ----------------------------- config (small, deterministic) ----------------
B = 2            # batch
S = 8            # sequence length
D_MODEL = 32     # d_model
N_HEADS = 4      # num_heads (model-parallel world size == 1)
D_KV = 8         # d_kv
INNER = N_HEADS * D_KV
LORA_R = 8       # LoRA rank r
NUM_BUCKETS = 32
MAX_DISTANCE = 128


# ----------------------------- fused Pallas kernel ---------------------------
def _lora_attn_kernel(x_ref, bias_ref, wqkv_ref, laqkv_ref, lbqkv_ref,
                      wo_ref, lao_ref, lbo_ref, out_ref,
                      *, n_heads, d_kv, approx_recip):
    # x_ref:     (1, S, D)            this batch element's hidden states
    # bias_ref:  (1, H, S, S)         position bias (+mask)
    # wqkv_ref:  (D, 3*inner)         [Wq^T | Wk^T | Wv^T]
    # laqkv_ref: (D, 3*r)             [Aq^T | Ak^T | Av^T]
    # lbqkv_ref: (3*r, 3*inner)       block-diag(Bq^T, Bk^T, Bv^T)
    # wo_ref:    (inner, D)           Wo^T
    # lao_ref:   (inner, r)           Ao^T
    # lbo_ref:   (r, D)               Bo^T
    cdt = wqkv_ref.dtype                      # matmul compute dtype (f32 or bf16)
    s_len = x_ref.shape[1]
    inner = n_heads * d_kv

    x2d = x_ref[0].astype(cdt)                                   # (S, D)

    # ---- fused base QKV + fused (block-diagonal) LoRA QKV: 3 MXU matmuls ----
    qkv = jnp.dot(x2d, wqkv_ref[...], preferred_element_type=jnp.float32)
    mid = jnp.dot(x2d, laqkv_ref[...], preferred_element_type=jnp.float32)
    qkv = qkv + jnp.dot(mid.astype(cdt), lbqkv_ref[...],
                        preferred_element_type=jnp.float32)      # (S, 3*inner)

    # ---- head-major split: one relayout, no per-head slicing loop ----------
    qkv_h = jnp.transpose(qkv.reshape(s_len, 3 * n_heads, d_kv),
                          (1, 0, 2)).astype(cdt)                 # (3H, S, d_kv)
    q = qkv_h[:n_heads]                                          # (H, S, d_kv)
    k = qkv_h[n_heads:2 * n_heads]
    v = qkv_h[2 * n_heads:]

    # ---- attention (T5: no 1/sqrt(d) scaling); softmax kept in f32 ---------
    scores = jnp.einsum('hqd,hkd->hqk', q, k,
                        preferred_element_type=jnp.float32)      # (H, S, S)
    scores = scores + bias_ref[0]
    m = jnp.max(scores, axis=-1, keepdims=True)
    e = jnp.exp(scores - m)
    l = jnp.sum(e, axis=-1, keepdims=True)
    if approx_recip:
        p = e * pl.reciprocal(l, approx=True)                    # EUP slot
    else:
        p = e / l                                                # exact parity
    attn = jnp.einsum('hqk,hkd->hqd', p.astype(cdt), v,
                      preferred_element_type=jnp.float32)        # (H, S, d_kv)

    # ---- output projection + output LoRA (LoRA applied to pre-proj attn) ---
    attn2d = jnp.transpose(attn, (1, 0, 2)).reshape(s_len, inner).astype(cdt)
    out = jnp.dot(attn2d, wo_ref[...], preferred_element_type=jnp.float32)
    omid = jnp.dot(attn2d, lao_ref[...], preferred_element_type=jnp.float32)
    out = out + jnp.dot(omid.astype(cdt), lbo_ref[...],
                        preferred_element_type=jnp.float32)      # (S, D)
    out_ref[0] = out.astype(out_ref.dtype)


def _fused_attention(x, bias, w):
    """x: (B, S, D) in compute dtype; bias: (1 or B, H, S, S) f32."""
    Bb, Ss, Dm = x.shape
    n_heads = bias.shape[1]
    inner = w['w_o'].shape[0]
    d_kv = inner // n_heads
    r = w['la_o'].shape[1]

    # batch-invariant bias (the common case) is stored/DMA'd once, not B times
    if bias.shape[0] == 1:
        bias_idx = lambda b: (0, 0, 0, 0)
    else:
        bias_idx = lambda b: (b, 0, 0, 0)

    kernel = functools.partial(
        _lora_attn_kernel, n_heads=n_heads, d_kv=d_kv,
        approx_recip=(w['w_qkv'].dtype != jnp.float32))

    return pl.pallas_call(
        kernel,
        out_shape=jax.ShapeDtypeStruct((Bb, Ss, Dm), jnp.float32),
        grid=(Bb,),
        in_specs=[
            pl.BlockSpec((1, Ss, Dm), lambda b: (b, 0, 0)),
            pl.BlockSpec((1, n_heads, Ss, Ss), bias_idx),
            pl.BlockSpec((Dm, 3 * inner), lambda b: (0, 0)),
            pl.BlockSpec((Dm, 3 * r), lambda b: (0, 0)),
            pl.BlockSpec((3 * r, 3 * inner), lambda b: (0, 0)),
            pl.BlockSpec((inner, Dm), lambda b: (0, 0)),
            pl.BlockSpec((inner, r), lambda b: (0, 0)),
            pl.BlockSpec((r, Dm), lambda b: (0, 0)),
        ],
        out_specs=pl.BlockSpec((1, Ss, Dm), lambda b: (b, 0, 0)),
        compiler_params=pltpu.CompilerParams(
            dimension_semantics=("parallel",)),   # v7x: shard batch over 2 TCs
    )(x, bias, w['w_qkv'], w['la_qkv'], w['lb_qkv'],
      w['w_o'], w['la_o'], w['lb_o'])


# ----------------------- relative position bias (plain-JAX glue) -------------
def _relative_position_bucket(rel_pos, bidirectional=True,
                              num_buckets=32, max_distance=128):
    relative_buckets = jnp.zeros_like(rel_pos)
    if bidirectional:
        num_buckets //= 2
        relative_buckets = relative_buckets + \
            (rel_pos > 0).astype(jnp.int32) * num_buckets
        rel_pos = jnp.abs(rel_pos)
    else:
        rel_pos = -jnp.minimum(rel_pos, jnp.zeros_like(rel_pos))
    max_exact = num_buckets // 2
    is_small = rel_pos < max_exact
    # clamp to >= 1 before the log to avoid log(0); masked by is_small anyway
    rel_pos_f = jnp.maximum(rel_pos.astype(jnp.float32), 1.0)
    rp_large = max_exact + (
        jnp.log(rel_pos_f / max_exact) / math.log(max_distance / max_exact)
        * (num_buckets - max_exact)
    ).astype(jnp.int32)
    rp_large = jnp.minimum(rp_large,
                           jnp.full_like(rp_large, num_buckets - 1))
    return relative_buckets + jnp.where(is_small, rel_pos, rp_large)


def compute_relative_position_bias(query_length, key_length, bidirectional,
                                   rel_attn_bias_table,
                                   num_buckets=NUM_BUCKETS,
                                   max_distance=MAX_DISTANCE):
    # rel_attn_bias_table: (num_buckets, n_heads) — nn.Embedding weight
    ctx = jnp.arange(query_length, dtype=jnp.int32)[:, None]
    mem = jnp.arange(key_length, dtype=jnp.int32)[None, :]
    rel = mem - ctx
    bucket = _relative_position_bucket(rel, bidirectional,
                                       num_buckets, max_distance)
    values = rel_attn_bias_table[bucket]             # (q, k, H)
    return jnp.transpose(values, (2, 0, 1))[None]    # (1, H, q, k)


# ----------------------------- weight prep (done ONCE) -----------------------
def prepare_weights(params, compute_dtype=jnp.float32):
    """Pre-transpose to [in, out], fuse QKV base weights and LoRA adapters,
    and cast matmul weights to the compute dtype (bf16 at real sizes)."""
    r = params['lora_a_q'].shape[0]
    inner = params['q_w'].shape[0]
    w_qkv = jnp.concatenate(
        [params['q_w'].T, params['k_w'].T, params['v_w'].T], axis=1)   # (D, 3*inner)
    la_qkv = jnp.concatenate(
        [params['lora_a_q'].T, params['lora_a_k'].T,
         params['lora_a_v'].T], axis=1)                                # (D, 3r)
    lb_qkv = jnp.zeros((3 * r, 3 * inner), jnp.float32)
    lb_qkv = lb_qkv.at[0:r, 0:inner].set(params['lora_b_q'].T)
    lb_qkv = lb_qkv.at[r:2 * r, inner:2 * inner].set(params['lora_b_k'].T)
    lb_qkv = lb_qkv.at[2 * r:3 * r, 2 * inner:3 * inner].set(params['lora_b_v'].T)
    cd = compute_dtype
    return {
        'w_qkv': w_qkv.astype(cd),
        'la_qkv': la_qkv.astype(cd),
        'lb_qkv': lb_qkv.astype(cd),
        'w_o': params['o_w'].T.astype(cd),          # (inner, D)
        'la_o': params['lora_a_o'].T.astype(cd),    # (inner, r)
        'lb_o': params['lora_b_o'].T.astype(cd),    # (r, D)
        'rel_bias': params['rel_bias'],             # f32, plain-JAX bias glue
    }


# ----------------------------- forward (module semantics) --------------------
def lora_t5_attention_forward(w, hidden_states, attention_mask=None,
                              position_bias=None):
    """LoraParallelT5Attention.forward — encoder self-attention path
    (use_cache=False, encoder_hidden_states=None), dropout = identity."""
    Bb, Ss, _ = hidden_states.shape
    if position_bias is None:
        position_bias = compute_relative_position_bias(
            Ss, Ss, bidirectional=True, rel_attn_bias_table=w['rel_bias'])
    if attention_mask is not None:
        position_bias = position_bias + attention_mask
    bias_k = position_bias.astype(jnp.float32)       # (1 or B, H, S, S)
    x_k = hidden_states.astype(w['w_qkv'].dtype)     # halve DMA bytes in bf16 mode
    out = _fused_attention(x_k, bias_k, w)
    # TODO(synk): decoder path (use_cache=True KV cache) and cross-attention
    # (encoder_hidden_states) are not implemented; this is the encoder block.
    return out, position_bias


# ----------------------------- pure-JAX reference ----------------------------
def ref_forward(params, hidden_states, attention_mask=None):
    def lin(x, wt):
        return x @ wt.T

    def lora(x, a, b):           # apply_lora(x, A, B) = B(A(x))
        return lin(lin(x, a), b)

    Bb, Ss, _ = hidden_states.shape

    def heads(y):
        return y.reshape(Bb, Ss, N_HEADS, D_KV).transpose(0, 2, 1, 3)

    x = hidden_states
    q = heads(lin(x, params['q_w']) + lora(x, params['lora_a_q'], params['lora_b_q']))
    k = heads(lin(x, params['k_w']) + lora(x, params['lora_a_k'], params['lora_b_k']))
    v = heads(lin(x, params['v_w']) + lora(x, params['lora_a_v'], params['lora_b_v']))

    bias = compute_relative_position_bias(Ss, Ss, True, params['rel_bias'])
    if attention_mask is not None:
        bias = bias + attention_mask
    scores = jnp.einsum('bhqd,bhkd->bhqk', q, k) + bias
    p = jax.nn.softmax(scores, axis=-1)
    a = jnp.einsum('bhqk,bhkd->bhqd', p, v)
    a = a.transpose(0, 2, 1, 3).reshape(Bb, Ss, INNER)
    out = lin(a, params['o_w']) + lora(a, params['lora_a_o'], params['lora_b_o'])
    return out, bias


# ----------------------------- param init & main -----------------------------
def init_params(key):
    ks = jax.random.split(key, 13)
    s = 0.02
    ls = 0.05
    return {
        'q_w': s * jax.random.normal(ks[0], (INNER, D_MODEL), jnp.float32),
        'k_w': s * jax.random.normal(ks[1], (INNER, D_MODEL), jnp.float32),
        'v_w': s * jax.random.normal(ks[2], (INNER, D_MODEL), jnp.float32),
        'o_w': s * jax.random.normal(ks[3], (D_MODEL, INNER), jnp.float32),
        'rel_bias': s * jax.random.normal(ks[4], (NUM_BUCKETS, N_HEADS), jnp.float32),
        # LoRA adapters, nn.Linear layout [out, in].  The module zero-inits the
        # lora_b_* weights; small nonzero values here so the LoRA path is tested.
        'lora_a_q': ls * jax.random.normal(ks[5], (LORA_R, D_MODEL), jnp.float32),
        'lora_b_q': ls * jax.random.normal(ks[6], (INNER, LORA_R), jnp.float32),
        'lora_a_k': ls * jax.random.normal(ks[7], (LORA_R, D_MODEL), jnp.float32),
        'lora_b_k': ls * jax.random.normal(ks[8], (INNER, LORA_R), jnp.float32),
        'lora_a_v': ls * jax.random.normal(ks[9], (LORA_R, D_MODEL), jnp.float32),
        'lora_b_v': ls * jax.random.normal(ks[10], (INNER, LORA_R), jnp.float32),
        'lora_a_o': ls * jax.random.normal(ks[11], (LORA_R, INNER), jnp.float32),
        'lora_b_o': ls * jax.random.normal(ks[12], (D_MODEL, LORA_R), jnp.float32),
        # TODO(synk): apply_lora's scaling factor (alpha/r) is not visible in
        # the spec; assumed to be 1 (plain B(A(x))).
    }


if __name__ == "__main__":
    key = jax.random.PRNGKey(0)
    kp, kx = jax.random.split(key)
    params = init_params(kp)
    x = jax.random.normal(kx, (B, S, D_MODEL), jnp.float32)

    ref_out, ref_bias = ref_forward(params, x, attention_mask=None)

    # ---- f32 compute: exact-parity check against the reference -------------
    w32 = prepare_weights(params, compute_dtype=jnp.float32)
    out32, bias32 = lora_t5_attention_forward(w32, x, attention_mask=None)
    out32 = jax.block_until_ready(out32)
    assert out32.shape == (B, S, D_MODEL)
    assert bias32.shape == (1, N_HEADS, S, S)
    assert jnp.allclose(bias32, ref_bias, atol=1e-6, rtol=1e-6)
    err32 = float(jnp.max(jnp.abs(out32 - ref_out)))
    assert jnp.allclose(out32, ref_out, atol=2e-4, rtol=2e-3), f"f32 max err {err32}"

    # ---- bf16 matmul operands / f32 accumulation & softmax -----------------
    wbf = prepare_weights(params, compute_dtype=jnp.bfloat16)
    outbf, _ = lora_t5_attention_forward(wbf, x, attention_mask=None)
    outbf = jax.block_until_ready(outbf)
    errbf = float(jnp.max(jnp.abs(outbf - ref_out)))
    assert jnp.allclose(outbf, ref_out, atol=3e-3, rtol=3e-2), f"bf16 max err {errbf}"

    print("KERNEL_OK")
</pallas_src>

<mosaic_0001>
module attributes {stable_mosaic.version = 11 : i64} {
  func.func @_lora_attn_kernel(%arg0: i32, %arg1: memref<1x8x32xf32, #tpu.memory_space<vmem>>, %arg2: memref<1x4x8x8xf32, #tpu.memory_space<vmem>>, %arg3: memref<32x96xf32, #tpu.memory_space<vmem>>, %arg4: memref<32x24xf32, #tpu.memory_space<vmem>>, %arg5: memref<24x96xf32, #tpu.memory_space<vmem>>, %arg6: memref<32x32xf32, #tpu.memory_space<vmem>>, %arg7: memref<32x8xf32, #tpu.memory_space<vmem>>, %arg8: memref<8x32xf32, #tpu.memory_space<vmem>>, %arg9: memref<1x8x32xf32, #tpu.memory_space<vmem>>) attributes {dimension_semantics = [#tpu.dimension_semantics<parallel>], iteration_bounds = array<i64: 2>, scalar_prefetch = 0 : i64, scratch_operands = 0 : i64, tpu.core_type = #tpu.core_type<tc>, window_params = [{transform_indices = @transform_0, window_bounds = array<i64: 1, 8, 32>}, {pipeline_mode = #tpu.pipeline_mode<synchronous>, transform_indices = @transform_1, window_bounds = array<i64: 1, 4, 8, 8>}, {pipeline_mode = #tpu.pipeline_mode<synchronous>, transform_indices = @transform_2, window_bounds = array<i64: 32, 96>}, {pipeline_mode = #tpu.pipeline_mode<synchronous>, transform_indices = @transform_3, window_bounds = array<i64: 32, 24>}, {pipeline_mode = #tpu.pipeline_mode<synchronous>, transform_indices = @transform_4, window_bounds = array<i64: 24, 96>}, {pipeline_mode = #tpu.pipeline_mode<synchronous>, transform_indices = @transform_5, window_bounds = array<i64: 32, 32>}, {pipeline_mode = #tpu.pipeline_mode<synchronous>, transform_indices = @transform_6, window_bounds = array<i64: 32, 8>}, {pipeline_mode = #tpu.pipeline_mode<synchronous>, transform_indices = @transform_7, window_bounds = array<i64: 8, 32>}, {transform_indices = @transform_8, window_bounds = array<i64: 1, 8, 32>}]} {
    %c0 = arith.constant 0 : index
    %c0_0 = arith.constant 0 : index
    %c0_1 = arith.constant 0 : index
    %0 = vector.load %arg1[%c0, %c0_0, %c0_1] : memref<1x8x32xf32, #tpu.memory_space<vmem>>, vector<1x8x32xf32>
    %1 = vector.shape_cast %0 : vector<1x8x32xf32> to vector<8x32xf32>
    %c0_2 = arith.constant 0 : index
    %c0_3 = arith.constant 0 : index
    %2 = vector.load %arg3[%c0_2, %c0_3] : memref<32x96xf32, #tpu.memory_space<vmem>>, vector<32x96xf32>
    %cst = arith.constant dense<0.000000e+00> : vector<8x96xf32>
    %3 = tpu.matmul %1, %2, %cst {dimension_numbers = #tpu.dot_dimension_numbers<[1], [0], [0], [1], [0, 0, 1, 1], [], []>} : vector<8x32xf32>, vector<32x96xf32>, vector<8x96xf32> -> vector<8x96xf32>
    %c0_4 = arith.constant 0 : index
    %c0_5 = arith.constant 0 : index
    %4 = vector.load %arg4[%c0_4, %c0_5] : memref<32x24xf32, #tpu.memory_space<vmem>>, vector<32x24xf32>
    %cst_6 = arith.constant dense<0.000000e+00> : vector<8x24xf32>
    %5 = tpu.matmul %1, %4, %cst_6 {dimension_numbers = #tpu.dot_dimension_numbers<[1], [0], [0], [1], [0, 0, 1, 1], [], []>} : vector<8x32xf32>, vector<32x24xf32>, vector<8x24xf32> -> vector<8x24xf32>
    %c0_7 = arith.constant 0 : index
    %c0_8 = arith.constant 0 : index
    %6 = vector.load %arg5[%c0_7, %c0_8] : memref<24x96xf32, #tpu.memory_space<vmem>>, vector<24x96xf32>
    %cst_9 = arith.constant dense<0.000000e+00> : vector<8x96xf32>
    %7 = tpu.matmul %5, %6, %cst_9 {dimension_numbers = #tpu.dot_dimension_numbers<[1], [0], [0], [1], [0, 0, 1, 1], [], []>} : vector<8x24xf32>, vector<24x96xf32>, vector<8x96xf32> -> vector<8x96xf32>
    %8 = arith.addf %3, %7 : vector<8x96xf32>
    %9 = vector.shape_cast %8 : vector<8x96xf32> to vector<8x12x8xf32>
    %10 = tpu.transpose %9, [1, 0, 2] : vector<8x12x8xf32> -> vector<12x8x8xf32>
    %11 = vector.extract_strided_slice %10 {offsets = [0, 0, 0], sizes = [4, 8, 8], strides = [1, 1, 1]} : vector<12x8x8xf32> to vector<4x8x8xf32>
    %12 = vector.extract_strided_slice %10 {offsets = [4, 0, 0], sizes = [4, 8, 8], strides = [1, 1, 1]} : vector<12x8x8xf32> to vector<4x8x8xf32>
    %13 = vector.extract_strided_slice %10 {offsets = [8, 0, 0], sizes = [4, 8, 8], strides = [1, 1, 1]} : vector<12x8x8xf32> to vector<4x8x8xf32>
    "tpu.trace_start"() <{level = 10 : i32, message = "hqd,hkd->hqk"}> : () -> ()
    %cst_10 = arith.constant dense<0.000000e+00> : vector<4x8x8xf32>
    %14 = tpu.matmul %11, %12, %cst_10 {dimension_numbers = #tpu.dot_dimension_numbers<[2], [2], [1], [1], [0, 0, 0, 1, 1, 1], [0], [0]>} : vector<4x8x8xf32>, vector<4x8x8xf32>, vector<4x8x8xf32> -> vector<4x8x8xf32>
    "tpu.trace_stop"() : () -> ()
    %c0_11 = arith.constant 0 : index
    %c0_12 = arith.constant 0 : index
    %c0_13 = arith.constant 0 : index
    %c0_14 = arith.constant 0 : index
    %15 = vector.load %arg2[%c0_11, %c0_12, %c0_13, %c0_14] : memref<1x4x8x8xf32, #tpu.memory_space<vmem>>, vector<1x4x8x8xf32>
    %16 = vector.shape_cast %15 : vector<1x4x8x8xf32> to vector<4x8x8xf32>
    %17 = arith.addf %14, %16 : vector<4x8x8xf32>
    %cst_15 = arith.constant dense<0xFF800000> : vector<4x8xf32>
    %18 = vector.multi_reduction <maximumf>, %17, %cst_15 [2] : vector<4x8x8xf32> to vector<4x8xf32>
    %19 = vector.shape_cast %18 : vector<4x8xf32> to vector<4x8x1xf32>
    %20 = vector.broadcast %19 : vector<4x8x1xf32> to vector<4x8x8xf32>
    %21 = arith.subf %17, %20 : vector<4x8x8xf32>
    %22 = math.exp %21 : vector<4x8x8xf32>
    %cst_16 = arith.constant dense<0.000000e+00> : vector<4x8xf32>
    %23 = vector.multi_reduction <add>, %22, %cst_16 [2] : vector<4x8x8xf32> to vector<4x8xf32>
    %24 = vector.shape_cast %23 : vector<4x8xf32> to vector<4x8x1xf32>
    %25 = vector.broadcast %24 : vector<4x8x1xf32> to vector<4x8x8xf32>
    %26 = arith.divf %22, %25 : vector<4x8x8xf32>
    "tpu.trace_start"() <{level = 10 : i32, message = "hqk,hkd->hqd"}> : () -> ()
    %cst_17 = arith.constant dense<0.000000e+00> : vector<4x8x8xf32>
    %27 = tpu.matmul %26, %13, %cst_17 {dimension_numbers = #tpu.dot_dimension_numbers<[2], [1], [1], [2], [0, 0, 0, 1, 1, 2], [0], [0]>} : vector<4x8x8xf32>, vector<4x8x8xf32>, vector<4x8x8xf32> -> vector<4x8x8xf32>
    "tpu.trace_stop"() : () -> ()
    %28 = tpu.transpose %27, [1, 0, 2] : vector<4x8x8xf32> -> vector<8x4x8xf32>
    %29 = vector.shape_cast %28 : vector<8x4x8xf32> to vector<8x32xf32>
    %c0_18 = arith.constant 0 : index
    %c0_19 = arith.constant 0 : index
    %30 = vector.load %arg6[%c0_18, %c0_19] : memref<32x32xf32, #tpu.memory_space<vmem>>, vector<32x32xf32>
    %cst_20 = arith.constant dense<0.000000e+00> : vector<8x32xf32>
    %31 = tpu.matmul %29, %30, %cst_20 {dimension_numbers = #tpu.dot_dimension_numbers<[1], [0], [0], [1], [0, 0, 1, 1], [], []>} : vector<8x32xf32>, vector<32x32xf32>, vector<8x32xf32> -> vector<8x32xf32>
    %c0_21 = arith.constant 0 : index
    %c0_22 = arith.constant 0 : index
    %32 = vector.load %arg7[%c0_21, %c0_22] : memref<32x8xf32, #tpu.memory_space<vmem>>, vector<32x8xf32>
    %cst_23 = arith.constant dense<0.000000e+00> : vector<8x8xf32>
    %33 = tpu.matmul %29, %32, %cst_23 {dimension_numbers = #tpu.dot_dimension_numbers<[1], [0], [0], [1], [0, 0, 1, 1], [], []>} : vector<8x32xf32>, vector<32x8xf32>, vector<8x8xf32> -> vector<8x8xf32>
    %c0_24 = arith.constant 0 : index
    %c0_25 = arith.constant 0 : index
    %34 = vector.load %arg8[%c0_24, %c0_25] : memref<8x32xf32, #tpu.memory_space<vmem>>, vector<8x32xf32>
    %cst_26 = arith.constant dense<0.000000e+00> : vector<8x32xf32>
    %35 = tpu.matmul %33, %34, %cst_26 {dimension_numbers = #tpu.dot_dimension_numbers<[1], [0], [0], [1], [0, 0, 1, 1], [], []>} : vector<8x8xf32>, vector<8x32xf32>, vector<8x32xf32> -> vector<8x32xf32>
    %36 = arith.addf %31, %35 : vector<8x32xf32>
    %c0_27 = arith.constant 0 : index
    %c0_28 = arith.constant 0 : index
    %c0_29 = arith.constant 0 : index
    %37 = vector.load %arg9[%c0_27, %c0_28, %c0_29] : memref<1x8x32xf32, #tpu.memory_space<vmem>>, vector<1x8x32xf32>
    %38 = vector.shape_cast %37 : vector<1x8x32xf32> to vector<8x32xf32>
    %39 = vector.shape_cast %36 : vector<8x32xf32> to vector<1x8x32xf32>
    tpu.vector_store %arg9[%c0_27, %c0_28, %c0_29], %39 {strides = array<i32>} : memref<1x8x32xf32, #tpu.memory_space<vmem>>, vector<1x8x32xf32>,
    return
  }
  func.func @transform_0(%arg0: i32) -> (i32, i32, i32) {
    %c0_i32 = arith.constant 0 : i32
    %c0_i32_0 = arith.constant 0 : i32
    %c0_i32_1 = arith.constant 0 : i32
    return %arg0, %c0_i32, %c0_i32_0 : i32, i32, i32
  }
  func.func @transform_1(%arg0: i32) -> (i32, i32, i32, i32) {
    %c0_i32 = arith.constant 0 : i32
    %c0_i32_0 = arith.constant 0 : i32
    %c0_i32_1 = arith.constant 0 : i32
    %c0_i32_2 = arith.constant 0 : i32
    %c0_i32_3 = arith.constant 0 : i32
    return %c0_i32, %c0_i32_0, %c0_i32_1, %c0_i32_2 : i32, i32, i32, i32
  }
  func.func @transform_2(%arg0: i32) -> (i32, i32) {
    %c0_i32 = arith.constant 0 : i32
    %c0_i32_0 = arith.constant 0 : i32
    %c0_i32_1 = arith.constant 0 : i32
    return %c0_i32, %c0_i32_0 : i32, i32
  }
  func.func @transform_3(%arg0: i32) -> (i32, i32) {
    %c0_i32 = arith.constant 0 : i32
    %c0_i32_0 = arith.constant 0 : i32
    %c0_i32_1 = arith.constant 0 : i32
    return %c0_i32, %c0_i32_0 : i32, i32
  }
  func.func @transform_4(%arg0: i32) -> (i32, i32) {
    %c0_i32 = arith.constant 0 : i32
    %c0_i32_0 = arith.constant 0 : i32
    %c0_i32_1 = arith.constant 0 : i32
    return %c0_i32, %c0_i32_0 : i32, i32
  }
  func.func @transform_5(%arg0: i32) -> (i32, i32) {
    %c0_i32 = arith.constant 0 : i32
    %c0_i32_0 = arith.constant 0 : i32
    %c0_i32_1 = arith.constant 0 : i32
    return %c0_i32, %c0_i32_0 : i32, i32
  }
  func.func @transform_6(%arg0: i32) -> (i32, i32) {
    %c0_i32 = arith.constant 0 : i32
    %c0_i32_0 = arith.constant 0 : i32
    %c0_i32_1 = arith.constant 0 : i32
    return %c0_i32, %c0_i32_0 : i32, i32
  }
  func.func @transform_7(%arg0: i32) -> (i32, i32) {
    %c0_i32 = arith.constant 0 : i32
    %c0_i32_0 = arith.constant 0 : i32
    %c0_i32_1 = arith.constant 0 : i32
    return %c0_i32, %c0_i32_0 : i32, i32
  }
  func.func @transform_8(%arg0: i32) -> (i32, i32, i32) {
    %c0_i32 = arith.constant 0 : i32
    %c0_i32_0 = arith.constant 0 : i32
    %c0_i32_1 = arith.constant 0 : i32
    return %arg0, %c0_i32, %c0_i32_0 : i32, i32, i32
  }
}

</mosaic_0001>

<bundles_post_ra>
// kernel: tpu_custom_call.1
= control target key start
LH: loop header
LB: loop body
LE: loop exit
PB: predicated region body
PF: predicated region fallthrough
CT: control target
= control target key end

     0   :  { %13 = vsyncpa [#allocation3], 0  ;;  %s3071_s0 = inlined_call_operand.hbm [shape: f32[2,8,32], index: 0, kind: input, shape index: {}]   ;;  %s3072_s1 = inlined_call_operand.vmem [shape: f32[1,4,8,8], index: 1, kind: input, shape index: {}]   ;;  %s3073_s2 = inlined_call_operand.vmem [shape: f32[32,96], index: 2, kind: input, shape index: {}]   ;;  %s3074_s3 = inlined_call_operand.vmem [shape: f32[32,24], index: 3, kind: input, shape index: {}]   ;;  %s3075_s4 = inlined_call_operand.hbm [shape: f32[24,96], index: 4, kind: input, shape index: {}]   ;;  %s3076_s5 = inlined_call_operand.vmem [shape: f32[32,32], index: 5, kind: input, shape index: {}]   ;;  %s3077_s6 = inlined_call_operand.vmem [shape: f32[32,8], index: 6, kind: input, shape index: {}]   ;;  %s3078_s7 = inlined_call_operand.vmem [shape: f32[8,32], index: 7, kind: input, shape index: {}]   ;;  %s3079_s8 = inlined_call_operand.hbm [shape: f32[2,8,32], index: 8, kind: output, shape index: {}]  }
   0x1   :  { %15 = vsyncpa [#allocation3 + $0x1], 0 }
   0x2   :  { %16 = vsyncpa [#allocation6], 0 }
   0x3   :  { %17 = vsyncpa [#allocation4], 0 }
   0x4   :  { %19 = vsyncpa [#allocation4 + $0x1], 0  ;;  %s2633_s27 = smov 0   ;;  %s2635_s28 = smov 0  }
   0x5   :  { %s2637_s29 = smov 0   ;;  %s2639_s30 = smov 0  }
   0x6 LB: > { %s2654_s9 = sadd.s32 4294967295, %s2562_s30   ;;  %s2125_s10 = sadd.s32 4294967294, %s2562_s30   ;;  %s2562_s30 = sphi %s2639_s30, %s3099_s30   ;;  %s2558_s29 = sphi %s2637_s29, %s3102_s29   ;;  %s2554_s28 = sphi %s2635_s28, %s3101_s28   ;;  %s2550_s27 = sphi %s2633_s27, %s3100_s27  }
   0x7   : > { %p45_p0 = scmp.ne.s32.totalorder %s2554_s28, %s2550_s27  ;;  %p3080_p1 = scmp.eq.s32.totalorder %s2654_s9, 0 }
   0x8   : > { %p222_p3 = scmp.eq.s32.totalorder %s2125_s10, 1  ;;  %p2126_p5 = scmp.ge.s32.totalorder %s2562_s30, 1 }
   0x9   : > { %p2663_p4 = por %p3080_p1, %p45_p0  ;;  %p229_p7 = scmp.lt.s32.totalorder %s2562_s30, 3 }
   0xa   : > { %p2668_p6 = por %p222_p3, %p45_p0  ;;  %s2564_s14 = smov [#allocation5]  }
   0xb   : > { %s3085_s11 = scalar_select %p2663_p4, 1, 0 }
   0xc   : > { %s3086_s12 = scalar_select %p2668_p6, 1, 0 }
   0xd   : > { %p2673_p8 = pnand %p2126_p5, %p229_p7  ;;  %s250_s15 = sshll.u32 %s2564_s14, 4  ;;  %s2677_s15 = int_to_ptr.vmem [resolvable:$true] %s250_s15 }
   0xe   : > { %s2689_s17 = sadd.s32 1, %s2562_s30   ;;  %s32_s18 = sadd.s32 1, %s2558_s29 }
   0xf   : > { %s3087_s13 = scalar_select %p2673_p8, 1, 0 }
  0x10   : > { %p2348_p9 = pneg %p2673_p8  ;;  %3089 = sst [smem:[#allocation11_spill]] %s2689_s17 }
  0x11   : > { %s29_s19 = ssub.s32 %s2562_s30, %s2689_s17  ;;  %s2434_s22 = scalar_lea.hbm %s3075_s4, 384 }
  0x12   : > { %p2684_p11 = pnand %p2348_p9, %p3080_p1  ;;  %p2435_p12 = scmp.ne.s32.totalorder %s3075_s4, %s2434_s22 }
  0x13   : > { %p2441_p5 = scmp.lt.u32.totalorder %s2434_s22, %s3075_s4 }
  0x14   : > { %p2436_p13 = pneg %p2684_p11 }
  0x16   : > { %p2437_p0 = pnand %p2436_p13, %p2435_p12 }
  0x18   : > { %p2438_p3 = pneg %p2437_p0 }
  0x1a   : > { %p2443_p7 = pnand %p2441_p5, %p2438_p3 }
  0x1c   : > { %2446 = shalt.err (!%p2443_p7)
}
  0x1d   : > { %s2447_s10 = scalar_lea.vmem %s2677_s15, 384  ;;  %p2455_p2 = scmp.lt.s32.totalorder %s2677_s15, %s2677_s15 }
  0x1e   : > { %p2448_p9 = scmp.ne.s32.totalorder %s2677_s15, %s2447_s10  ;;  %p2456_p6 = scmp.lt.s32.totalorder %s2447_s10, %s2447_s10 }
  0x20   : > { %p2450_p10 = pnand %p2448_p9, %p2436_p13  ;;  %p2457_p4 = por %p2456_p6, %p2455_p2 }
  0x22   : > { %p2451_p1 = pneg %p2450_p10 }
  0x24   : > { %p2458_p8 = pnand %p2457_p4, %p2451_p1 }
  0x26   : > { %2461 = shalt.err (!%p2458_p8)
}
  0x27   : > { %s2565_s14 = smov 128   ;;  %s2566_s20 = smov 8  }
  0x28   : > { %2351 = dma.hbm_to_vmem [thread:$0]  (!%p2684_p11), %s3075_s4, 384, %s2677_s15, [#allocation6], %s2565_s14, %s2565_s14, %s2566_s20  }
  0x29   : > { %p30_p2 = scmp.eq.s32.totalorder %s29_s19, 0  ;;  %p39_p1 = scmp.ne.s32.totalorder %s2558_s29, %s2554_s28 }
  0x2a   : > { %p40_p4 = scmp.eq.s32.totalorder %s2562_s30, 0  ;;  %p2361_p6 = scmp.lt.s32.totalorder %s2562_s30, 2 }
  0x2b   : > { %s2720_s23 = scalar_select %p30_p2, %s2558_s29, %s32_s18  }
  0x2c   : > { %p41_p8 = por %p40_p4, %p39_p1  ;;  %p3090_p10 = scmp.eq.s32.totalorder %s2654_s9, 1 }
  0x2d   : > { %s273_s25 = sand.u32 1, %s2558_s29   ;;  %s2130_s26 = sshll.u32 %s2562_s30, 7 }
  0x2e   : > { %p2724_p12 = por %p3090_p10, %p39_p1  ;;  %s2129_s10 = sshll.u32 %s273_s25, 3 }
  0x2f   : > { %s2733_s21 = scalar_lea.hbm %s3071_s0, %s2130_s26  ;;  %s277_s15 = scalar_lea.vmem [#allocation2], %s2129_s10 }
  0x30   : > { %s284_s18 = sshll.u32 %s277_s15, 4  ;;  %p2735_p11 = pnand %p2361_p6, %p41_p8  ;;  %s2739_s18 = int_to_ptr.vmem [resolvable:$true] %s284_s18 }
  0x31   : > { %s274_s14 = scalar_lea.sflag [#allocation3], %s273_s25  ;;  %s2462_s20 = scalar_lea.hbm %s2733_s21, 128 }
  0x32   : > { %p2463_p13 = scmp.ne.s32.totalorder %s2733_s21, %s2462_s20  ;;  %p2464_p0 = pneg %p2735_p11 }
  0x33   : > { %s2467_s26 = scalar_lea.hbm %s3071_s0, 256  ;;  %p2468_p7 = scmp.lt.u32.totalorder %s2733_s21, %s3071_s0 }
  0x34   : > { %p2465_p3 = pnand %p2464_p0, %p2463_p13  ;;  %p2469_p9 = scmp.lt.u32.totalorder %s2467_s26, %s2462_s20 }
  0x35   : > { %p2471_p1 = scmp.lt.u32.totalorder %s2462_s20, %s2733_s21 }
  0x36   : > { %p2466_p5 = pneg %p2465_p3  ;;  %p2470_p2 = por %p2469_p9, %p2468_p7 }
  0x38   : > { %p2472_p4 = por %p2471_p1, %p2470_p2 }
  0x3a   : > { %p2473_p6 = pnand %p2472_p4, %p2466_p5 }
  0x3c   : > { %2476 = shalt.err (!%p2473_p6)
}
  0x3d   : > { %s2477_s25 = scalar_lea.vmem %s2739_s18, 128  ;;  %s2567_s15 = smov [#allocation2]  }
  0x3e   : > { %p2478_p8 = scmp.ne.s32.totalorder %s2739_s18, %s2477_s25  ;;  %s2482_s17 = sshll.u32 %s2567_s15, 4  ;;  %s2483_s17 = int_to_ptr.vmem [resolvable:$false] %s2482_s17 }
  0x3f   : > { %s2484_s22 = scalar_lea.vmem %s2483_s17, 256  ;;  %p2485_p3 = scmp.lt.s32.totalorder %s2739_s18, %s2483_s17 }
  0x40   : > { %p2480_p10 = pnand %p2478_p8, %p2464_p0  ;;  %p2486_p7 = scmp.lt.s32.totalorder %s2484_s22, %s2477_s25 }
  0x42   : > { %p2481_p13 = pneg %p2480_p10  ;;  %p2487_p9 = por %p2486_p7, %p2485_p3 }
  0x44   : > { %p2488_p2 = pnand %p2487_p9, %p2481_p13 }
  0x46   : > { %2491 = shalt.err (!%p2488_p2)
}
  0x47   : > { %2355 = dma.hbm_to_vmem [thread:$0]  (!%p2735_p11), %s2733_s21, 128, %s2739_s18, %s274_s14  }
  0x48   : > { %p3093_p5 = scmp.ne.s32.totalorder %s3087_s13, 0 }
  0x49   : > { %s2769_s20 = sand.u32 (!%p3093_p5), 1, %s2554_s28   ;;  %p3094_p0 = scmp.ne.s32.totalorder (!%p3093_p5), %s3085_s11, 0 }
  0x4a   : > { %293 = sbr.rel (%p3093_p5) target bundleno = 2016 (0x7e0), region = 52  ;;  %s2132_s26 = sshll.u32 (!%p3093_p5), %s2769_s20, 3 }
  0x4b   : > { %s296_s10 = scalar_lea.sflag (!%p3093_p5), [#allocation3], %s2769_s20  ;;  %s299_s16 = scalar_lea.vmem (!%p3093_p5), [#allocation2], %s2132_s26 }
  0x51   : > { %2537 = dma.done.wait (%p3094_p0), %s296_s10, 128  }
  0x52   : > { %2539 = vsyncadd (%p3094_p0), %s296_s10, 4294967168  ;;  %p3095_p11 = scmp.eq.s32.totalorder %s2654_s9, 0 }
  0x54   : > { %2541 = dma.done.wait (%p3095_p11), [#allocation6], 384   ;;  %p3096_p1 = pmov %p3095_p11 }
  0x55   : > { %v2568_v0 = vmov 0.0|0.0   ;;  %vm2569_vm0 = vmmov 0   ;;  %v2570_v1 = vmov 0.0   ;;  %v341_v2 = vld [vmem:[%s3074_s3] sm:$0xff]  ;;  %v342_v3 = vld [vmem:[%s3074_s3 + $0x8] sm:$0xff]  ;;  %v343_v4 = vld [vmem:[%s3074_s3 + $0x10] sm:$0xff]  ;;  %v605_v25 = vlaneseq }
  0x56   : > { %2543 = vsyncadd (%p3096_p1), [#allocation6], 4294966912  ;;  %2309 = vmatprep.subr.bf16.mxu0 %v2568_v0  ;;  %2219 = vmatprep.mubr.msk.f32.mxu0 %vm2569_vm0, %v2570_v1  ;;  %v2310_v5 = vpack.c.bf16 %v342_v3, %v341_v2  ;;  %v344_v6 = vld [vmem:[%s3074_s3 + $0x18] sm:$0xff]  ;;  %v419_v7 = vld [vmem:[#allocation5] sm:$0xff]  ;;  %vm345_vm1 = vcmask 261120   ;;  %vm422_vm2 = vcmask 195584  }
  0x57   : > { %2315 = vmatprep.subr.bf16.mxu1 %v2568_v0  ;;  %2228 = vmatprep.mubr.msk.f32.mxu1 %vm2569_vm0, %v2570_v1  ;;  %v420_v8 = vld [vmem:[#allocation5 + $0x8] sm:$0xff]  ;;  %v2313_v9 = vpack.c.bf16 %v344_v6, %v343_v4  ;;  %v336_v11 = vld [vmem:[%s299_s16] sm:$0xff]  ;;  %v339_v16 = vld [vmem:[%s3073_s2 + $0x10] sm:$0xff]  ;;  %s2571_s19 = smov 80   ;;  %s2572_s14 = smov 96   ;;  %v606_v29 = vshrl.u32 %v605_v25, 7 }
  0x58   : > { %2311 = vmatpush3.bf16.msra.mxu0 %v2310_v5  ;;  %v2316_v10 = vpack.c.bf16 %v420_v8, %v419_v7  ;;  %v421_v12 = vld [vmem:[#allocation5 + $0x10] sm:$0xff]  ;;  %v338_v14 = vld [vmem:[%s3073_s2 + $0x8] sm:$0xff]  ;;  %v340_v17 = vld [vmem:[%s3073_s2 + $0x18] sm:$0xff]  ;;  %s2573_s25 = smov 72   ;;  %s2574_s15 = smov 88   ;;  %vm1012_vm3 = vcmask 64512  }
  0x59   : > { %2312 = vmatprep.subr.bf16.mxu0 %v2568_v0  ;;  %v337_v13 = vld [vmem:[%s3073_s2] sm:$0xff]  ;;  %v2322_v20 = vpack.c.bf16 %v340_v17, %v339_v16  ;;  %s2575_s17 = smov 112   ;;  %s2576_s22 = smov 120   ;;  %v2578_v23 = vmov 1983009808   ;;  %vm1802_vm4 = vcmask 130048  }
  0x5a   : > { %2317 = vmatpush3.bf16.msra.mxu1 %v2316_v10  ;;  %v2319_v15 = vpack.c.bf16 %v338_v14, %v337_v13  ;;  %s2577_s10 = smov 104   ;;  %v603_v24 = vunpack.c.l.s4 %v2578_v23  ;;  %v2579_v26 = vmov 1934713408   ;;  %s2032_s21 = scalar_lea.sflag [#allocation4], %s2769_s20 }
  0x5b   : > { %2226 = vmatprep.subr.mxu1 %v2570_v1  ;;  %v667_v27 = vunpack.c.l.s4 %v2579_v26 }
  0x5c   : > { %2314 = vmatpush3.bf16.msra.mxu0 %v2313_v9  ;;  %v604_v28 = vunpack.c.0.s8 %v603_v24 }
  0x5d   : > { %2247 = vmatprep.subr.mxu0 %v2570_v1  ;;  %v668_v32 = vunpack.c.0.s8 %v667_v27 }
  0x5e   : > { %2227 = vmatpush3.msra.mxu1 %v421_v12  ;;  %v2837_v33 = vsub.s32 %v604_v28, %v606_v29 }
  0x5f   : > { %2220 = vmatmul.mubr.msk.f32.vlgmr.msra.gmra.mrb[0].mxu0 %vm345_vm1, %v336_v11  ;;  %2318 = vmatprep.subr.bf16.mxu1 %v2568_v0  ;;  %v2839_v40 = vsub.s32 %v668_v32, %v606_v29 }
  0x60   : > { %2249 = vmatprep.mubr.msk.f32.mxu0 %vm2569_vm0, %v2570_v1 }
 0x132   : > { %v415_v18 = vpop.f32.mrb[0].mxu0 }
 0x133   : > { %v2221_v19 = vpop.f32.mrb[1].mxu0  ;;  %2229 = vmatmul.mubr.msk.f32.vlgmr.msra.gmra.mrb[0].mxu1 %vm422_vm2, %v415_v18 }
 0x134   : > { %2320 = vmatpush3.bf16.msra.mxu1 %v2319_v15  ;;  %2239 = vmatprep.mubr.msk.f32.mxu1 %vm2569_vm0, %v2570_v1 }
 0x135   : > { %2321 = vmatprep.subr.bf16.mxu1 %v2568_v0 }
 0x138   : > { %2323 = vmatpush3.bf16.msra.mxu1 %v2322_v20 }
 0x139   : > { %2242 = vmatprep.subr.mxu1 %v2570_v1 }
 0x13b   : > { %2240 = vmatmul.mubr.msk.f32.vlgmr.msra.gmra.mrb[0].mxu1 %vm345_vm1, %v336_v11 }
 0x13c   : > { %2244 = vmatprep.mubr.msk.f32.mxu1 %vm2569_vm0, %v2570_v1 }
 0x20e   : > { %v2828_v21 = vpop.f32.mrb[0].mxu1 }
 0x20f   : > { %582 = vrot.lane.b32.xlu1 %v2828_v21, %s2571_s19  ;;  %576 = vrot.lane.b32.xlu0 %v2828_v21, %s2572_s14  ;;  %v2241_v22 = vpop.f32.mrb[1].mxu1 }
 0x213   : > { %585 = vrot.lane.b32.xlu1 %v2828_v21, %s2573_s25  ;;  %579 = vrot.lane.b32.xlu0 %v2828_v21, %s2574_s15  ;;  %s2580_s15 = smov 56  }
 0x217   : > { %570 = vrot.lane.b32.xlu1 %v2828_v21, %s2575_s17  ;;  %567 = vrot.lane.b32.xlu0 %v2828_v21, %s2576_s22  ;;  %s2581_s17 = smov 64   ;;  %s2582_s22 = smov 48  }
 0x21b   : > { %573 = vrot.lane.b32.xlu0 %v2828_v21, %s2577_s10  ;;  %s2583_s10 = smov 40  }
 0x281   : > { %v583_v30 = vpop.permute.xlu1 %582  ;;  %v577_v31 = vpop.permute.xlu0 %576 }
 0x282   : > { %v632_v34 = vcombine.low %v577_v31, %v583_v30  ;;  %v633_v35 = vcombine.high %v577_v31, %v583_v30 }
 0x284   : > { %v640_v41 = vrot.slane %v632_v34, %v2837_v33  ;;  %v647_v42 = vrot.slane %v633_v35, %v2837_v33 }
 0x285   : > { %v586_v36 = vpop.permute.xlu1 %585  ;;  %v580_v37 = vpop.permute.xlu0 %579 }
 0x286   : > { %v648_v38 = vcombine.low %v580_v37, %v586_v36  ;;  %v649_v39 = vcombine.high %v580_v37, %v586_v36 }
 0x288   : > { %v656_v43 = vrot.slane %v648_v38, %v2837_v33  ;;  %v663_v44 = vrot.slane %v649_v39, %v2837_v33 }
 0x289   : > { %v568_v45 = vpop.permute.xlu0 %567  ;;  %v571_v50 = vpop.permute.xlu1 %570 }
 0x28a   : > { %v696_v46 = vcombine.low %v640_v41, %v656_v43  ;;  %v697_v47 = vcombine.high %v640_v41, %v656_v43  ;;  %v712_v48 = vcombine.low %v647_v42, %v663_v44  ;;  %v713_v49 = vcombine.high %v647_v42, %v663_v44 }
 0x28b   : > { %v600_v55 = vcombine.low %v2828_v21, %v571_v50  ;;  %v601_v56 = vcombine.high %v2828_v21, %v571_v50 }
 0x28c   : > { %v704_v51 = vrot.slane %v696_v46, %v2839_v40  ;;  %v711_v52 = vrot.slane %v697_v47, %v2839_v40  ;;  %v720_v53 = vrot.slane %v712_v48, %v2839_v40  ;;  %v727_v54 = vrot.slane %v713_v49, %v2839_v40 }
 0x28d   : > { %v574_v57 = vpop.permute.xlu0 %573  ;;  %v608_v6 = vrot.slane %v600_v55, %v2837_v33  ;;  %v615_v7 = vrot.slane %v601_v56, %v2837_v33 }
 0x28e   : > { %v2139_v58 = vcombine.low %v704_v51, %v711_v52  ;;  %v2141_v59 = vcombine.high %v704_v51, %v711_v52  ;;  %v2143_v60 = vcombine.low %v720_v53, %v727_v54  ;;  %v2145_v61 = vcombine.high %v720_v53, %v727_v54  ;;  %v1008_v53 = vld [vmem:[%s3072_s1] sm:$0xff]  ;;  %v1009_v54 = vld [vmem:[%s3072_s1 + $0x8] sm:$0xff] }
 0x28f   : > { %v616_v62 = vcombine.low %v568_v45, %v574_v57  ;;  %v617_v63 = vcombine.high %v568_v45, %v574_v57 }
 0x290   : > { %v819_v2 = vrot.slane %v2139_v58, %v2837_v33  ;;  %v835_v3 = vrot.slane %v2141_v59, %v2837_v33  ;;  %v851_v4 = vrot.slane %v2143_v60, %v2837_v33  ;;  %v867_v5 = vrot.slane %v2145_v61, %v2837_v33  ;;  %v1010_v61 = vld [vmem:[%s3072_s1 + $0x10] sm:$0xff] }
 0x291   : > { %v624_v8 = vrot.slane %v616_v62, %v2837_v33  ;;  %v631_v9 = vrot.slane %v617_v63, %v2837_v33  ;;  %v1011_v62 = vld [vmem:[%s3072_s1 + $0x18] sm:$0xff] }
 0x292   : > { %v884_v10 = vcombine.low %v819_v2, %v835_v3  ;;  %v916_v11 = vcombine.low %v851_v4, %v867_v5  ;;  %v885_v29 = vcombine.high %v819_v2, %v835_v3  ;;  %v917_v30 = vcombine.high %v851_v4, %v867_v5 }
 0x293   : > { %v664_v12 = vcombine.low %v608_v6, %v624_v8  ;;  %v665_v13 = vcombine.high %v608_v6, %v624_v8  ;;  %v680_v14 = vcombine.low %v615_v7, %v631_v9  ;;  %v681_v15 = vcombine.high %v615_v7, %v631_v9 }
 0x294   : > { %v892_v16 = vrot.slane %v884_v10, %v2839_v40  ;;  %v924_v17 = vrot.slane %v916_v11, %v2839_v40  ;;  %v899_v41 = vrot.slane %v885_v29, %v2839_v40  ;;  %v931_v42 = vrot.slane %v917_v30, %v2839_v40 }
 0x295   : > { %v672_v18 = vrot.slane %v664_v12, %v2839_v40  ;;  %v679_v19 = vrot.slane %v665_v13, %v2839_v40  ;;  %v688_v20 = vrot.slane %v680_v14, %v2839_v40  ;;  %v695_v22 = vrot.slane %v681_v15, %v2839_v40 }
 0x296   : > { %v936_v23 = vcombine.low %v892_v16, %v924_v17  ;;  %v937_v24 = vcombine.high %v892_v16, %v924_v17  ;;  %v938_v49 = vcombine.low %v899_v41, %v931_v42  ;;  %v939_v50 = vcombine.high %v899_v41, %v931_v42 }
 0x297   : > { %v2138_v25 = vcombine.low %v672_v18, %v679_v19  ;;  %v2140_v26 = vcombine.high %v672_v18, %v679_v19  ;;  %v2142_v27 = vcombine.low %v688_v20, %v695_v22  ;;  %v2144_v28 = vcombine.high %v688_v20, %v695_v22 }
 0x298   : > { %2243 = vmatpush3.xpose.msk.msra.mxu1 %vm1012_vm3, %v936_v23  ;;  %2248 = vmatpush3.xpose.msk.msra.mxu0 %vm1012_vm3, %v937_v24 }
 0x299   : > { %v812_v31 = vrot.slane %v2138_v25, %v2837_v33  ;;  %v828_v32 = vrot.slane %v2140_v26, %v2837_v33  ;;  %v844_v34 = vrot.slane %v2142_v27, %v2837_v33  ;;  %v860_v35 = vrot.slane %v2144_v28, %v2837_v33  ;;  %2252 = vmatprep.subr.mxu1 %v2570_v1 }
 0x29a   : > { %2257 = vmatprep.subr.mxu0 %v2570_v1 }
 0x29b   : > { %v868_v36 = vcombine.low %v812_v31, %v828_v32  ;;  %v869_v37 = vcombine.high %v812_v31, %v828_v32  ;;  %v900_v38 = vcombine.low %v844_v34, %v860_v35  ;;  %v901_v39 = vcombine.high %v844_v34, %v860_v35 }
 0x29d   : > { %v876_v43 = vrot.slane %v868_v36, %v2839_v40  ;;  %v908_v44 = vrot.slane %v900_v38, %v2839_v40  ;;  %v883_v47 = vrot.slane %v869_v37, %v2839_v40  ;;  %v915_v48 = vrot.slane %v901_v39, %v2839_v40 }
 0x29f   : > { %v932_v45 = vcombine.low %v876_v43, %v908_v44  ;;  %v933_v46 = vcombine.high %v876_v43, %v908_v44  ;;  %v934_v51 = vcombine.low %v883_v47, %v915_v48  ;;  %v935_v52 = vcombine.high %v883_v47, %v915_v48 }
 0x2a1   : > { %2245 = vmatmul.mubr.msk.f32.vlgmr.msra.gmra.mrb[2].mxu1 %vm1012_vm3, %v932_v45  ;;  %2250 = vmatmul.mubr.msk.f32.vlgmr.msra.gmra.mrb[2].mxu0 %vm1012_vm3, %v933_v46 }
 0x2a2   : > { %2253 = vmatpush3.xpose.msk.msra.mxu1 %vm1012_vm3, %v938_v49  ;;  %2258 = vmatpush3.xpose.msk.msra.mxu0 %vm1012_vm3, %v939_v50 }
 0x2a3   : > { %2254 = vmatprep.mubr.msk.f32.mxu1 %vm2569_vm0, %v2570_v1  ;;  %2259 = vmatprep.mubr.msk.f32.mxu0 %vm2569_vm0, %v2570_v1 }
 0x2a4   : > { %2262 = vmatprep.subr.mxu1 %v2570_v1  ;;  %2267 = vmatprep.subr.mxu0 %v2570_v1 }
 0x2a5   : > { %2255 = vmatmul.mubr.msk.f32.vlgmr.msra.gmra.mrb[4].mxu1 %vm1012_vm3, %v934_v51  ;;  %2260 = vmatmul.mubr.msk.f32.vlgmr.msra.gmra.mrb[4].mxu0 %vm1012_vm3, %v935_v52 }
 0x2a6   : > { %2264 = vmatprep.mubr.msk.f32.mxu1 %vm2569_vm0, %v2570_v1  ;;  %2269 = vmatprep.mubr.msk.f32.mxu0 %vm2569_vm0, %v2570_v1 }
 0x374   : > { %v1085_v55 = vpop.f32.mrb[2].mxu1  ;;  %v1161_v56 = vpop.f32.mrb[2].mxu0 }
 0x375   : > { %v1086_v57 = vadd.f32 %v1085_v55, %v1008_v53  ;;  %v1162_v58 = vadd.f32 %v1161_v56, %v1009_v54  ;;  %v2246_v59 = vpop.f32.mrb[3].mxu1  ;;  %v2251_v60 = vpop.f32.mrb[3].mxu0 }
 0x377   : > { %v1317_v63 = vsel %vm1012_vm3, %v1086_v57, -inf  ;;  %v1320_v2 = vsel %vm1012_vm3, %v1162_v58, -inf }
 0x378   : > { %1318 = vmax.xlane.f32.xlu1 %v1317_v63  ;;  %v1237_v3 = vpop.f32.mrb[4].mxu1  ;;  %1321 = vmax.xlane.f32.xlu0 %v1320_v2  ;;  %v1313_v4 = vpop.f32.mrb[4].mxu0 }
 0x379   : > { %v1238_v5 = vadd.f32 %v1237_v3, %v1010_v61  ;;  %v1314_v6 = vadd.f32 %v1313_v4, %v1011_v62  ;;  %v2256_v7 = vpop.f32.mrb[5].mxu1  ;;  %v2261_v8 = vpop.f32.mrb[5].mxu0 }
 0x37b   : > { %v1323_v9 = vsel %vm1012_vm3, %v1238_v5, -inf  ;;  %v1326_v10 = vsel %vm1012_vm3, %v1314_v6, -inf }
 0x37c   : > { %1324 = vmax.xlane.f32.xlu0 %v1323_v9  ;;  %1327 = vmax.xlane.f32.xlu1 %v1326_v10 }
 0x38d   : > { %591 = vrot.lane.b32.xlu1 %v2828_v21, %s2580_s15  ;;  %s2584_s15 = smov 16  }
 0x392   : > { %588 = vrot.lane.b32.xlu0 %v2828_v21, %s2581_s17  ;;  %s2585_s17 = smov 8  }
 0x405   : > { %v1319_v11 = vpop.xlane.xlu1 %1318  ;;  %v1322_v12 = vpop.xlane.xlu0 %1321 }
 0x406   : > { %v1329_v13 = vsub.f32 %v1086_v57, %v1319_v11  ;;  %v1330_v14 = vsub.f32 %v1162_v58, %v1322_v12 }
 0x408   : > { %v1333_v15 = vmul.f32 1.442695, %v1329_v13  ;;  %v1335_v16 = vmul.f32 1.442695, %v1330_v14 }
 0x409   : > { %v1325_v17 = vpop.xlane.xlu0 %1324  ;;  %v1328_v18 = vpop.xlane.xlu1 %1327 }
 0x40a   : > { %2418 = vpow2.f32 %v1333_v15  ;;  %v1331_v19 = vsub.f32 %v1238_v5, %v1325_v17  ;;  %v1332_v20 = vsub.f32 %v1314_v6, %v1328_v18 }
 0x40b   : > { %2420 = vpow2.f32 %v1335_v16 }
 0x40c   : > { %v1337_v22 = vmul.f32 1.442695, %v1331_v19  ;;  %v1339_v23 = vmul.f32 1.442695, %v1332_v20 }
 0x40d   : > { %v589_v32 = vpop.permute.xlu0 %588  ;;  %v592_v34 = vpop.permute.xlu1 %591 }
 0x40e   : > { %2422 = vpow2.f32 %v1337_v22 }
 0x40f   : > { %2424 = vpow2.f32 %v1339_v23 }
 0x414   : > { %v2913_v24 = vpop.eup %2418 }
 0x415   : > { %v2915_v25 = vpop.eup %2420  ;;  %v1341_v26 = vsel %vm1012_vm3, %v2913_v24, 0.0 }
 0x416   : > { %1342 = vadd.xlane.f32.xlu0 %v1341_v26  ;;  %v1344_v27 = vsel %vm1012_vm3, %v2915_v25, 0.0 }
 0x417   : > { %1345 = vadd.xlane.f32.xlu1 %v1344_v27 }
 0x418   : > { %v2921_v28 = vpop.eup %2422 }
 0x419   : > { %v2923_v29 = vpop.eup %2424  ;;  %v1347_v30 = vsel %vm1012_vm3, %v2921_v28, 0.0 }
 0x41a   : > { %1348 = vadd.xlane.f32.xlu0 %v1347_v30  ;;  %v1350_v31 = vsel %vm1012_vm3, %v2923_v29, 0.0 }
 0x41b   : > { %1351 = vadd.xlane.f32.xlu1 %v1350_v31 }
 0x42c   : > { %594 = vrot.lane.b32.xlu1 %v2828_v21, %s2582_s22  ;;  %s2586_s22 = smov 24  }
 0x430   : > { %597 = vrot.lane.b32.xlu0 %v2828_v21, %s2583_s10 }
 0x4a3   : > { %v1343_v35 = vpop.xlane.xlu0 %1342 }
 0x4a4   : > { %v1346_v36 = vpop.xlane.xlu1 %1345  ;;  %2426 = vrcp.f32 %v1343_v35 }
 0x4a5   : > { %2428 = vrcp.f32 %v1346_v36 }
 0x4a7   : > { %v1349_v37 = vpop.xlane.xlu0 %1348 }
 0x4a8   : > { %v1352_v38 = vpop.xlane.xlu1 %1351  ;;  %2430 = vrcp.f32 %v1349_v37 }
 0x4a9   : > { %2432 = vrcp.f32 %v1352_v38 }
 0x4ab   : > { %v598_v39 = vpop.permute.xlu0 %597 }
 0x4ac   : > { %v752_v41 = vcombine.low %v592_v34, %v598_v39  ;;  %v753_v42 = vcombine.high %v592_v34, %v598_v39  ;;  %v595_v43 = vpop.permute.xlu1 %594 }
 0x4ad   : > { %v736_v44 = vcombine.low %v589_v32, %v595_v43  ;;  %v737_v45 = vcombine.high %v589_v32, %v595_v43 }
 0x4ae   : > { %v760_v46 = vrot.slane %v752_v41, %v2837_v33  ;;  %v767_v47 = vrot.slane %v753_v42, %v2837_v33  ;;  %v2427_v5 = vpop.eup %2426 }
 0x4af   : > { %v744_v48 = vrot.slane %v736_v44, %v2837_v33  ;;  %v751_v21 = vrot.slane %v737_v45, %v2837_v33  ;;  %v2429_v9 = vpop.eup %2428  ;;  %v1354_v16 = vmul.f32 %v2427_v5, %v2913_v24  ;;  %v1809_v24 = vld [vmem:[%s3077_s6] sm:$0xff] }
 0x4b0   : > { %v1356_v17 = vmul.f32 %v2429_v9, %v2915_v25  ;;  %v1810_v25 = vld [vmem:[%s3077_s6 + $0x8] sm:$0xff] }
 0x4b1   : > { %v768_v49 = vcombine.low %v744_v48, %v760_v46  ;;  %v769_v50 = vcombine.high %v744_v48, %v760_v46  ;;  %v784_v51 = vcombine.low %v751_v21, %v767_v47  ;;  %v785_v52 = vcombine.high %v751_v21, %v767_v47  ;;  %v1811_v21 = vld [vmem:[%s3077_s6 + $0x10] sm:$0xff] }
 0x4b2   : > { %v2431_v15 = vpop.eup %2430  ;;  %v2325_v26 = vpack.c.bf16 %v1810_v25, %v1809_v24 }
 0x4b3   : > { %v776_v53 = vrot.slane %v768_v49, %v2839_v40  ;;  %v783_v54 = vrot.slane %v769_v50, %v2839_v40  ;;  %v792_v55 = vrot.slane %v784_v51, %v2839_v40  ;;  %v799_v56 = vrot.slane %v785_v52, %v2839_v40  ;;  %v2433_v18 = vpop.eup %2432  ;;  %v1812_v49 = vld [vmem:[%s3077_s6 + $0x18] sm:$0xff] }
 0x4b4   : > { %v1358_v22 = vmul.f32 %v2431_v15, %v2921_v28  ;;  %v1360_v23 = vmul.f32 %v2433_v18, %v2923_v29  ;;  %v1805_v18 = vld [vmem:[%s3076_s5] sm:$0xff] }
 0x4b5   : > { %v940_v57 = vcombine.low %v776_v53, %v783_v54  ;;  %v2146_v58 = vcombine.high %v776_v53, %v783_v54  ;;  %v956_v59 = vcombine.low %v792_v55, %v799_v56  ;;  %v2147_v60 = vcombine.high %v792_v55, %v799_v56 }
 0x4b6   : > { %v2328_v54 = vpack.c.bf16 %v1812_v49, %v1811_v21 }
 0x4b7   : > { %v947_v61 = vrot.slane %v940_v57, %v2837_v33  ;;  %v955_v62 = vrot.slane %v2146_v58, %v2837_v33  ;;  %v963_v63 = vrot.slane %v956_v59, %v2837_v33  ;;  %v971_v2 = vrot.slane %v2147_v60, %v2837_v33 }
 0x4b9   : > { %v972_v3 = vcombine.low %v947_v61, %v955_v62  ;;  %v973_v4 = vcombine.high %v947_v61, %v955_v62  ;;  %v988_v6 = vcombine.low %v963_v63, %v971_v2  ;;  %v989_v7 = vcombine.high %v963_v63, %v971_v2 }
 0x4bb   : > { %v980_v8 = vrot.slane %v972_v3, %v2839_v40  ;;  %v996_v10 = vrot.slane %v988_v6, %v2839_v40  ;;  %v987_v11 = vrot.slane %v973_v4, %v2839_v40  ;;  %v1003_v12 = vrot.slane %v989_v7, %v2839_v40 }
 0x4bd   : > { %v1004_v13 = vcombine.low %v980_v8, %v996_v10  ;;  %v1005_v14 = vcombine.high %v980_v8, %v996_v10  ;;  %v1006_v19 = vcombine.low %v987_v11, %v1003_v12  ;;  %v1007_v20 = vcombine.high %v987_v11, %v1003_v12 }
 0x4bf   : > { %2263 = vmatpush3.msra.mxu1 %v1004_v13  ;;  %2268 = vmatpush3.msra.mxu0 %v1005_v14 }
 0x4c0   : > { %2265 = vmatmul.mubr.msk.f32.vlgmr.msra.gmra.mrb[6].mxu1 %vm1012_vm3, %v1354_v16  ;;  %2270 = vmatmul.mubr.msk.f32.vlgmr.msra.gmra.mrb[6].mxu0 %vm1012_vm3, %v1356_v17 }
 0x4c1   : > { %2272 = vmatprep.subr.mxu1 %v2570_v1  ;;  %2277 = vmatprep.subr.mxu0 %v2570_v1 }
 0x4c2   : > { %2273 = vmatpush3.msra.mxu1 %v1006_v19  ;;  %2278 = vmatpush3.msra.mxu0 %v1007_v20  ;;  %v1806_v19 = vld [vmem:[%s3076_s5 + $0x8] sm:$0xff] }
 0x4c3   : > { %2274 = vmatprep.mubr.msk.f32.mxu1 %vm2569_vm0, %v2570_v1  ;;  %2279 = vmatprep.mubr.msk.f32.mxu0 %vm2569_vm0, %v2570_v1  ;;  %v2331_v20 = vpack.c.bf16 %v1806_v19, %v1805_v18 }
 0x4c4   : > { %2275 = vmatmul.mubr.msk.f32.vlgmr.msra.gmra.mrb[8].mxu1 %vm1012_vm3, %v1358_v22  ;;  %2280 = vmatmul.mubr.msk.f32.vlgmr.msra.gmra.mrb[8].mxu0 %vm1012_vm3, %v1360_v23  ;;  %v1807_v22 = vld [vmem:[%s3076_s5 + $0x10] sm:$0xff]  ;;  %v1808_v23 = vld [vmem:[%s3076_s5 + $0x18] sm:$0xff] }
 0x4c5   : > { %2324 = vmatprep.subr.bf16.mxu1 %v2568_v0  ;;  %2290 = vmatprep.mubr.msk.f32.mxu1 %vm2569_vm0, %v2570_v1 }
 0x4c6   : > { %2293 = vmatprep.subr.mxu0 %v2570_v1  ;;  %2295 = vmatprep.mubr.msk.f32.mxu0 %vm2569_vm0, %v2570_v1 }
 0x4c7   : > { %2326 = vmatpush3.bf16.msra.mxu1 %v2325_v26  ;;  %v2334_v26 = vpack.c.bf16 %v1808_v23, %v1807_v22 }
 0x4c8   : > { %2327 = vmatprep.subr.bf16.mxu1 %v2568_v0 }
 0x4cb   : > { %2329 = vmatpush3.bf16.msra.mxu1 %v2328_v54 }
 0x593   : > { %v1430_v27 = vpop.f32.mrb[6].mxu1  ;;  %v1503_v28 = vpop.f32.mrb[6].mxu0 }
 0x594   : > { %v2266_v29 = vpop.f32.mrb[7].mxu1  ;;  %v2271_v30 = vpop.f32.mrb[7].mxu0 }
 0x597   : > { %v1576_v31 = vpop.f32.mrb[8].mxu1  ;;  %v1649_v32 = vpop.f32.mrb[8].mxu0 }
 0x598   : > { %v1653_v34 = vcombine.low %v1430_v27, %v1576_v31  ;;  %v1654_v35 = vcombine.high %v1430_v27, %v1576_v31  ;;  %v1669_v36 = vcombine.low %v1503_v28, %v1649_v32  ;;  %v1670_v37 = vcombine.high %v1503_v28, %v1649_v32  ;;  %v2276_v38 = vpop.f32.mrb[9].mxu1  ;;  %v2281_v39 = vpop.f32.mrb[9].mxu0 }
 0x59a   : > { %v1661_v41 = vrot.slane %v1653_v34, %v2837_v33  ;;  %v1668_v42 = vrot.slane %v1654_v35, %v2837_v33  ;;  %v1677_v43 = vrot.slane %v1669_v36, %v2837_v33  ;;  %v1684_v44 = vrot.slane %v1670_v37, %v2837_v33 }
 0x59c   : > { %v1685_v45 = vcombine.low %v1661_v41, %v1677_v43  ;;  %v1686_v46 = vcombine.high %v1661_v41, %v1677_v43  ;;  %v1701_v47 = vcombine.low %v1668_v42, %v1684_v44  ;;  %v1702_v48 = vcombine.high %v1668_v42, %v1684_v44 }
 0x59e   : > { %v1693_v50 = vrot.slane %v1685_v45, %v2839_v40  ;;  %v1700_v51 = vrot.slane %v1686_v46, %v2839_v40  ;;  %v1709_v52 = vrot.slane %v1701_v47, %v2839_v40  ;;  %v1716_v53 = vrot.slane %v1702_v48, %v2839_v40 }
 0x5a0   : > { %v1721_v55 = vcombine.low %v1693_v50, %v1700_v51  ;;  %v2160_v56 = vcombine.high %v1693_v50, %v1700_v51  ;;  %v1737_v57 = vcombine.low %v1709_v52, %v1716_v53  ;;  %v2161_v58 = vcombine.high %v1709_v52, %v1716_v53 }
 0x5a2   : > { %v1728_v59 = vrot.slane %v1721_v55, %v2837_v33  ;;  %v1736_v60 = vrot.slane %v2160_v56, %v2837_v33  ;;  %v1744_v61 = vrot.slane %v1737_v57, %v2837_v33  ;;  %v1752_v62 = vrot.slane %v2161_v58, %v2837_v33 }
 0x5a4   : > { %v1754_v63 = vcombine.high %v1728_v59, %v1736_v60  ;;  %v1770_v2 = vcombine.high %v1744_v61, %v1752_v62  ;;  %v1753_v3 = vcombine.low %v1728_v59, %v1736_v60  ;;  %v1769_v4 = vcombine.low %v1744_v61, %v1752_v62 }
 0x5a6   : > { %v1768_v5 = vrot.slane %v1754_v63, %v2839_v40  ;;  %v1784_v6 = vrot.slane %v1770_v2, %v2839_v40  ;;  %v1761_v7 = vrot.slane %v1753_v3, %v2839_v40  ;;  %v1777_v8 = vrot.slane %v1769_v4, %v2839_v40  ;;  %v1886_v40 = vld [vmem:[%s3078_s7] sm:$0xff] }
 0x5a7   : > { %2294 = vmatpush3.msra.mxu0 %v1886_v40 }
 0x5a8   : > { %v1787_v9 = vcombine.low %v1768_v5, %v1784_v6  ;;  %v1786_v10 = vcombine.high %v1761_v7, %v1777_v8  ;;  %v1788_v11 = vcombine.high %v1768_v5, %v1784_v6  ;;  %v1785_v12 = vcombine.low %v1761_v7, %v1777_v8  ;;  %2330 = vmatprep.subr.bf16.mxu0 %v2568_v0 }
 0x5aa   : > { %1794 = vrot.lane.b32.xlu0 %v1787_v9, %s2584_s15  ;;  %1790 = vrot.lane.b32.xlu1 %v1786_v10, %s2585_s17  ;;  %s2166_s17 = sshll.u32 %s2654_s9, 7  ;;  %s2587_s9 = smov [#allocation7]  }
 0x5ab   : > { %s3026_s13 = scalar_lea.hbm %s3079_s8, %s2166_s17 }
 0x5ae   : > { %1798 = vrot.lane.b32.xlu1 %v1788_v11, %s2586_s22  ;;  %s335_s22 = scalar_lea.vmem [#allocation7], %s2132_s26  ;;  %s2496_s26 = sshll.u32 %s2587_s9, 4  ;;  %s2497_s26 = int_to_ptr.vmem [resolvable:$false] %s2496_s26 }
 0x5af   : > { %s2045_s10 = sshll.u32 %s335_s22, 4  ;;  %s2498_s19 = scalar_lea.vmem %s2497_s26, 256  ;;  %s3028_s10 = int_to_ptr.vmem [resolvable:$true] %s2045_s10 }
 0x5b0   : > { %s2492_s18 = scalar_lea.vmem %s3028_s10, 128  ;;  %p2499_p10 = scmp.lt.s32.totalorder %s3028_s10, %s2497_s26 }
 0x5b1   : > { %p2493_p4 = scmp.ne.s32.totalorder %s3028_s10, %s2492_s18  ;;  %p2500_p13 = scmp.lt.s32.totalorder %s2498_s19, %s2492_s18 }
 0x5b3   : > { %p2494_p6 = pnand %p2493_p4, %p2724_p12  ;;  %p2501_p3 = por %p2500_p13, %p2499_p10 }
 0x5b5   : > { %p2495_p8 = pneg %p2494_p6 }
 0x5b7   : > { %p2502_p7 = pnand %p2501_p3, %p2495_p8 }
 0x61c   : > { %v1791_v33 = vpop.permute.xlu1 %1790  ;;  %v1795_v13 = vpop.permute.xlu0 %1794 }
 0x61d   : > { %v1801_v14 = vsel %vm1012_vm3, %v1785_v12, %v1791_v33 }
 0x61e   : > { %v1803_v16 = vsel %vm1802_vm4, %v1801_v14, %v1795_v13 }
 0x620   : > { %v1799_v15 = vpop.permute.xlu1 %1798 }
 0x621   : > { %v1804_v17 = vsel %vm422_vm2, %v1803_v16, %v1799_v15 }
 0x622   : > { %2291 = vmatmul.mubr.msk.f32.vlgmr.msra.gmra.mrb[10].mxu1 %vm345_vm1, %v1804_v17 }
 0x6f5   : > { %v1882_v24 = vpop.f32.mrb[10].mxu1 }
 0x6f6   : > { %v2292_v25 = vpop.f32.mrb[11].mxu1  ;;  %2296 = vmatmul.mubr.msk.f32.vlgmr.msra.gmra.mrb[10].mxu0 %vm1012_vm3, %v1882_v24 }
 0x6f7   : > { %2332 = vmatpush3.bf16.msra.mxu0 %v2331_v20  ;;  %2306 = vmatprep.mubr.msk.f32.mxu0 %vm2569_vm0, %v2570_v1 }
 0x6f8   : > { %2333 = vmatprep.subr.bf16.mxu0 %v2568_v0 }
 0x6fb   : > { %2335 = vmatpush3.bf16.msra.mxu0 %v2334_v26 }
 0x6fe   : > { %2307 = vmatmul.mubr.msk.f32.vlgmr.msra.gmra.mrb[10].mxu0 %vm345_vm1, %v1804_v17 }
 0x7d1   : > { %v2026_v1 = vpop.f32.mrb[10].mxu0 }
 0x7d2   : > { %2030 = vst.msk [vmem:[%s335_s22] sm:$0xff] %vm345_vm1, %v2026_v1  ;;  %v2308_v0 = vpop.f32.mrb[11].mxu0 }
 0x7d3   : > { %2505 = shalt.err (!%p2502_p7)
}
 0x7d4   : > { %s2506_s20 = scalar_lea.hbm %s3026_s13, 128  ;;  %s2510_s15 = scalar_lea.hbm %s3079_s8, 256 }
 0x7d5   : > { %p2507_p9 = scmp.ne.s32.totalorder %s3026_s13, %s2506_s20  ;;  %p2511_p0 = scmp.lt.u32.totalorder %s3026_s13, %s3079_s8 }
 0x7d6   : > { %p2512_p11 = scmp.lt.u32.totalorder %s2510_s15, %s2506_s20  ;;  %p2514_p4 = scmp.lt.u32.totalorder %s2506_s20, %s3026_s13 }
 0x7d7   : > { %p2508_p2 = pnand %p2507_p9, %p2724_p12 }
 0x7d8   : > { %p2513_p1 = por %p2512_p11, %p2511_p0 }
 0x7d9   : > { %p2509_p5 = pneg %p2508_p2 }
 0x7da   : > { %p2515_p6 = por %p2514_p4, %p2513_p1 }
 0x7dc   : > { %p2516_p8 = pnand %p2515_p6, %p2509_p5 }
 0x7de   : > { %2519 = shalt.err (!%p2516_p8)
}
 0x7df   : > { %2346 = dma.vmem_to_hbm [thread:$0]  (%p2724_p12), %s3028_s10, 128, %s3026_s13, %s2032_s21  }
 0x7e0 PF: > { %s2057_s11 = sand.u32 1, %s2550_s27   ;;  %p3097_p10 = scmp.ne.s32.totalorder %s3086_s12, 0 }
 0x7e1   : > { %p3098_p13 = scmp.ge.s32.totalorder %s2562_s30, 2  ;;  %s2058_s16 = scalar_lea.sflag [#allocation4], %s2057_s11 }
 0x7e3   : > { %p2357_p3 = pnand %p3098_p13, %p3097_p10 }
 0x7e5   : > { %2545 = dma.done.wait (!%p2357_p3), %s2058_s16, 128  }
 0x7e6   : > { %2547 = vsyncadd (!%p2357_p3), %s2058_s16, 4294967168  ;;  %s3099_s30 = sld [smem:[#allocation11_spill]]  ;;  %s3100_s27 = smov %s2554_s28 }
 0x7e7   : > { %s3101_s28 = smov %s2558_s29  ;;  %s3102_s29 = smov %s2720_s23 }
 0x7ec   : > { %p22_p7 = scmp.ge.s32.totalorder %s3099_s30, 4  }
 0x7ee   :  { %24 = sbr.rel (!%p22_p7) target bundleno = 6 (0x6), region = 101 }
 0x7f5   :  { %2063 = vsyncpa [#allocation3], 1 }
 0x7f6   :  { %2065 = vsyncpa [#allocation3 + $0x1], 1 }
 0x7f7   :  { %2066 = vsyncpa [#allocation6], 1 }
 0x7f8   :  { %2067 = vsyncpa [#allocation4], 1 }
 0x7f9   :  { %2069 = vsyncpa [#allocation4 + $0x1], 1 }

</bundles_post_ra>
